<compile_context>
chip_gen: v5e
topology: v5e:2x2
jax: 0.10.0
libtpu: 0.0.40
codegen_flags: <defaults>
</compile_context>

<pallas_src>
import functools

import jax
import jax.numpy as jnp
import numpy as np
from jax.experimental import pallas as pl
from jax.experimental.pallas import tpu as pltpu

NEG_SLOPE = 0.01   # torch.nn.LeakyReLU default


def _leaky_relu(x):
    return jnp.where(x > 0, x, NEG_SLOPE * x)


def _sigmoid(x):
    return 1.0 / (1.0 + jnp.exp(-x))


def topic_aggregation_kernel(
    q_enc_ref,      # (bs*sl_q, 2*lstm)        question word encodings
    w_q_ref,        # (2*lstm, 2*lstm)         [wqy | wqg]
    b_q_ref,        # (1, 2*lstm)              [bqy | bqg]
    h_enc_ref,      # (bs*num_r*sl_h, 2*lstm)  history word encodings
    w_h_ref,        # (2*lstm, 2*lstm)         [why | whg]
    b_h_ref,        # (1, 2*lstm)              [bhy | bhg]
    h_emb_ref,      # (bs*num_r, sl_h, we)     history word embeddings
    not_pad_ref,    # (bs*num_r, 1, sl_h)      float 0/1 padding mask
    cms_ref,        # (bs*num_r, 1, 1)         context matching score
    q_emb_pad_ref,  # (bs*sl_q, 2*we)          [curr_q_word_embed | 0]
    sel_ref,        # (we, 2*we)               [0 | I] -> puts hist in right half
    wg_ref,         # (2*we, 2*we)             topic_gate weight
    bg_ref,         # (1, 2*we)                topic_gate bias
    out_ref,        # (bs*sl_q, 2*we)
    *, bs, num_r, sl_q, sl_h, lstm, we,
):
    rq = bs * sl_q

    # ---- GatedTrans (ques_emb): one (rq, 2*lstm)@(2*lstm, 2*lstm) matmul ----
    fq = (jnp.dot(q_enc_ref[...], w_q_ref[...],
                  preferred_element_type=jnp.float32) + b_q_ref[...])
    q_feat = jnp.tanh(fq[:, :lstm]) * _leaky_relu(fq[:, lstm:])

    # ---- GatedTrans (hist_emb) ----------------------------------------------
    fh = (jnp.dot(h_enc_ref[...], w_h_ref[...],
                  preferred_element_type=jnp.float32) + b_h_ref[...])
    h_feat = jnp.tanh(fh[:, :lstm]) * _leaky_relu(fh[:, lstm:])

    # ---- question <-> history word-level attention scores -------------------
    q_rep = jnp.broadcast_to(
        q_feat.reshape(bs, 1, sl_q, lstm), (bs, num_r, sl_q, lstm)
    ).reshape(bs * num_r, sl_q, lstm)
    h3 = h_feat.reshape(bs * num_r, sl_h, lstm)

    scores = jnp.einsum("bql,bhl->bqh", q_rep, h3,
                        preferred_element_type=jnp.float32)      # (B, sl_q, sl_h)
    npad = not_pad_ref[...]                                      # (B, 1, sl_h)
    logits = scores * npad + (npad - 1.0) * 10000.0
    logits = logits - jnp.max(logits, axis=-1, keepdims=True)
    e = jnp.exp(logits)
    att = e / jnp.sum(e, axis=-1, keepdims=True)                 # softmax over sl_h

    # Fold the per-round context-matching score into the attention weights so
    # the round-sum fuses into the same reduction (mathematically identical to
    # the reference ordering, differs only by fp reassociation).
    att = att * cms_ref[...]

    # ---- attention-weighted history word embeddings, summed over rounds -----
    topic = jnp.einsum("bqh,bhw->bqw", att, h_emb_ref[...],
                       preferred_element_type=jnp.float32)       # (B, sl_q, we)
    hist = jnp.sum(topic.reshape(bs, num_r, sl_q, we), axis=1)   # (bs, sl_q, we)
    hist = hist.reshape(rq, we)

    # ---- topic gate ----------------------------------------------------------
    # torch.cat((q_embed, hist), dim=-1) realized as padded-q + hist @ [0 | I]
    # so the kernel ends in a single dense store (no lane concat / masked vst).
    hq = q_emb_pad_ref[...] + jnp.dot(hist, sel_ref[...],
                                      preferred_element_type=jnp.float32)
    gate = _sigmoid(
        jnp.dot(hq, wg_ref[...], preferred_element_type=jnp.float32) + bg_ref[...]
    )
    out_ref[...] = (gate * hq).astype(out_ref.dtype)


def _topic_aggregation_impl(curr_q_word_embed, curr_q_word_encoded,
                            accu_h_word_embed, accu_h_word_encoded,
                            accu_h_not_pad, context_matching_score, params):
    """Forward pass of TopicAggregation (eval mode, dropout = identity).

    curr_q_word_embed:   (bs, sl_q, we)
    curr_q_word_encoded: (bs, sl_q, 2*lstm)
    accu_h_word_embed:   (bs, num_r, sl_h, we)
    accu_h_word_encoded: (bs, num_r, sl_h, 2*lstm)
    accu_h_not_pad:      (bs, num_r, sl_h)   0/1
    context_matching_score: (bs, num_r)
    returns: (bs, sl_q, 2*we)
    """
    bs, sl_q, we = curr_q_word_embed.shape
    _, num_r, sl_h, bilstm = accu_h_word_encoded.shape
    lstm = params["wqy"].shape[1]
    dt = curr_q_word_embed.dtype

    # Per-source fused GatedTrans weights: [wy | wg] (tiny, fused under jit).
    q_enc = curr_q_word_encoded.reshape(bs * sl_q, bilstm)
    h_enc = accu_h_word_encoded.reshape(bs * num_r * sl_h, bilstm)
    w_q = jnp.concatenate([params["wqy"], params["wqg"]], axis=1)
    b_q = jnp.concatenate([params["bqy"], params["bqg"]], axis=1)
    w_h = jnp.concatenate([params["why"], params["whg"]], axis=1)
    b_h = jnp.concatenate([params["bhy"], params["bhg"]], axis=1)

    h_emb = accu_h_word_embed.reshape(bs * num_r, sl_h, we)
    not_pad = accu_h_not_pad.reshape(bs * num_r, 1, sl_h).astype(jnp.float32)
    cms = context_matching_score.reshape(bs * num_r, 1, 1).astype(jnp.float32)

    # Lane-dense "concat" helpers: question embeds pre-padded into the left
    # half; a [0 | I] selector drops the history feature into the right half
    # via the (otherwise idle) MXU.
    q_emb_pad = jnp.pad(curr_q_word_embed.reshape(bs * sl_q, we),
                        ((0, 0), (0, we)))
    sel = jnp.eye(we, 2 * we, k=we, dtype=jnp.float32)

    vmem = pl.BlockSpec(memory_space=pltpu.MemorySpace.VMEM)
    kernel = functools.partial(
        topic_aggregation_kernel,
        bs=bs, num_r=num_r, sl_q=sl_q, sl_h=sl_h, lstm=lstm, we=we)

    out2d = pl.pallas_call(
        kernel,
        out_shape=jax.ShapeDtypeStruct((bs * sl_q, 2 * we), dt),
        in_specs=[vmem] * 13,
        out_specs=vmem,
    )(q_enc, w_q, b_q, h_enc, w_h, b_h, h_emb, not_pad, cms,
      q_emb_pad, sel, params["wg"], params["bg"])

    return out2d.reshape(bs, sl_q, 2 * we)


# Jit the wrapper so the layout plumbing around the custom call fuses instead
# of dispatching as eager per-op XLA kernels.
topic_aggregation = jax.jit(_topic_aggregation_impl)


def init_params(key, bilstm, lstm, we):
    """Kaiming-uniform weights; small random biases (to exercise the bias path —
    the real module inits biases to 0, which does not change forward semantics)."""
    ks = jax.random.split(key, 10)

    def kaiming(k, fan_in, shape):
        bound = float(np.sqrt(6.0 / fan_in))
        return jax.random.uniform(k, shape, jnp.float32, -bound, bound)

    return {
        "wqy": kaiming(ks[0], bilstm, (bilstm, lstm)),
        "bqy": 0.1 * jax.random.normal(ks[1], (1, lstm), jnp.float32),
        "wqg": kaiming(ks[2], bilstm, (bilstm, lstm)),
        "bqg": 0.1 * jax.random.normal(ks[3], (1, lstm), jnp.float32),
        "why": kaiming(ks[4], bilstm, (bilstm, lstm)),
        "bhy": 0.1 * jax.random.normal(ks[5], (1, lstm), jnp.float32),
        "whg": kaiming(ks[6], bilstm, (bilstm, lstm)),
        "bhg": 0.1 * jax.random.normal(ks[7], (1, lstm), jnp.float32),
        "wg":  kaiming(ks[8], 2 * we, (2 * we, 2 * we)),
        "bg":  0.1 * jax.random.normal(ks[9], (1, 2 * we), jnp.float32),
    }


def topic_aggregation_ref(curr_q_word_embed, curr_q_word_encoded,
                          accu_h_word_embed, accu_h_word_encoded,
                          accu_h_not_pad, context_matching_score, p):
    """Pure-JAX reference mirroring the PyTorch forward (dropout = identity)."""
    bs, sl_q, we = curr_q_word_embed.shape
    _, num_r, sl_h, _ = accu_h_word_encoded.shape
    lstm = p["wqy"].shape[1]

    def gated(x, wy, by, wg, bg):
        return jnp.tanh(x @ wy + by) * _leaky_relu(x @ wg + bg)

    q_feat = gated(curr_q_word_encoded, p["wqy"], p["bqy"], p["wqg"], p["bqg"])
    h_feat = gated(accu_h_word_encoded, p["why"], p["bhy"], p["whg"], p["bhg"])

    q_rep = jnp.broadcast_to(q_feat[:, None],
                             (bs, num_r, sl_q, lstm)).reshape(bs * num_r, sl_q, lstm)
    h_feat = h_feat.reshape(bs * num_r, sl_h, lstm)
    scores = jnp.einsum("bql,bhl->bqh", q_rep, h_feat)

    npad = accu_h_not_pad.reshape(bs * num_r, 1, sl_h).astype(jnp.float32)
    logits = scores * npad + (npad - 1.0) * 10000.0
    att = jax.nn.softmax(logits, axis=-1)

    topic = jnp.einsum("bqh,bhw->bqw", att,
                       accu_h_word_embed.reshape(bs * num_r, sl_h, we))
    topic = topic.reshape(bs, num_r, sl_q, we)
    hist = jnp.sum(context_matching_score.reshape(bs, num_r, 1, 1) * topic, axis=1)

    hq = jnp.concatenate([curr_q_word_embed, hist], axis=-1)
    gate = _sigmoid(hq @ p["wg"] + p["bg"])
    return gate * hq


if __name__ == "__main__":
    lstm_hidden = 32
    bilstm = 2 * lstm_hidden          # 64
    word_embedding = 32               # topic_gate width = 64
    bs, num_r, sl_q, sl_h = 2, 4, 8, 8

    key = jax.random.PRNGKey(0)
    ks = jax.random.split(key, 7)
    curr_q_word_embed = jax.random.normal(ks[0], (bs, sl_q, word_embedding), jnp.float32)
    curr_q_word_encoded = jax.random.normal(ks[1], (bs, sl_q, bilstm), jnp.float32)
    accu_h_word_embed = jax.random.normal(ks[2], (bs, num_r, sl_h, word_embedding), jnp.float32)
    accu_h_word_encoded = jax.random.normal(ks[3], (bs, num_r, sl_h, bilstm), jnp.float32)
    lengths = jax.random.randint(ks[4], (bs, num_r), 1, sl_h + 1)
    accu_h_not_pad = (jnp.arange(sl_h)[None, None, :] < lengths[..., None]).astype(jnp.float32)
    context_matching_score = jax.nn.softmax(
        jax.random.normal(ks[5], (bs, num_r), jnp.float32), axis=-1)
    params = init_params(ks[6], bilstm, lstm_hidden, word_embedding)

    out = topic_aggregation(curr_q_word_embed, curr_q_word_encoded,
                            accu_h_word_embed, accu_h_word_encoded,
                            accu_h_not_pad, context_matching_score, params)
    jax.block_until_ready(out)

    ref = topic_aggregation_ref(curr_q_word_embed, curr_q_word_encoded,
                                accu_h_word_embed, accu_h_word_encoded,
                                accu_h_not_pad, context_matching_score, params)
    assert out.shape == (bs, sl_q, 2 * word_embedding)
    np.testing.assert_allclose(np.asarray(out), np.asarray(ref), rtol=1e-4, atol=1e-4)
    print("KERNEL_OK")
</pallas_src>

<mosaic_0001>
module attributes {stable_mosaic.version = 11 : i64} {
  func.func @topic_aggregation_kernel(%arg0: memref<16x64xf32, #tpu.memory_space<vmem>>, %arg1: memref<64x64xf32, #tpu.memory_space<vmem>>, %arg2: memref<1x64xf32, #tpu.memory_space<vmem>>, %arg3: memref<64x64xf32, #tpu.memory_space<vmem>>, %arg4: memref<64x64xf32, #tpu.memory_space<vmem>>, %arg5: memref<1x64xf32, #tpu.memory_space<vmem>>, %arg6: memref<8x8x32xf32, #tpu.memory_space<vmem>>, %arg7: memref<8x1x8xf32, #tpu.memory_space<vmem>>, %arg8: memref<8x1x1xf32, #tpu.memory_space<vmem>>, %arg9: memref<16x64xf32, #tpu.memory_space<vmem>>, %arg10: memref<32x64xf32, #tpu.memory_space<vmem>>, %arg11: memref<64x64xf32, #tpu.memory_space<vmem>>, %arg12: memref<1x64xf32, #tpu.memory_space<vmem>>, %arg13: memref<16x64xf32, #tpu.memory_space<vmem>>) attributes {dimension_semantics = [], scalar_prefetch = 0 : i64, scratch_operands = 0 : i64, tpu.core_type = #tpu.core_type<tc>} {
    %c0 = arith.constant 0 : index
    %c0_0 = arith.constant 0 : index
    %0 = vector.load %arg0[%c0, %c0_0] : memref<16x64xf32, #tpu.memory_space<vmem>>, vector<16x64xf32>
    %c0_1 = arith.constant 0 : index
    %c0_2 = arith.constant 0 : index
    %1 = vector.load %arg1[%c0_1, %c0_2] : memref<64x64xf32, #tpu.memory_space<vmem>>, vector<64x64xf32>
    %cst = arith.constant dense<0.000000e+00> : vector<16x64xf32>
    %2 = tpu.matmul %0, %1, %cst {dimension_numbers = #tpu.dot_dimension_numbers<[1], [0], [0], [1], [0, 0, 1, 1], [], []>} : vector<16x64xf32>, vector<64x64xf32>, vector<16x64xf32> -> vector<16x64xf32>
    %c0_3 = arith.constant 0 : index
    %c0_4 = arith.constant 0 : index
    %3 = vector.load %arg2[%c0_3, %c0_4] : memref<1x64xf32, #tpu.memory_space<vmem>>, vector<1x64xf32>
    %4 = vector.broadcast %3 : vector<1x64xf32> to vector<16x64xf32>
    %5 = arith.addf %2, %4 : vector<16x64xf32>
    %6 = vector.extract_strided_slice %5 {offsets = [0, 0], sizes = [16, 32], strides = [1, 1]} : vector<16x64xf32> to vector<16x32xf32>
    %7 = math.tanh %6 : vector<16x32xf32>
    %8 = vector.extract_strided_slice %5 {offsets = [0, 32], sizes = [16, 32], strides = [1, 1]} : vector<16x64xf32> to vector<16x32xf32>
    %cst_5 = arith.constant 0.000000e+00 : f32
    %9 = vector.broadcast %cst_5 : f32 to vector<16x32xf32>
    %10 = arith.cmpf ogt, %8, %9 : vector<16x32xf32>
    %cst_6 = arith.constant 0.00999999977 : f32
    %11 = vector.broadcast %cst_6 : f32 to vector<16x32xf32>
    %12 = arith.mulf %11, %8 : vector<16x32xf32>
    %13 = arith.select %10, %8, %12 : vector<16x32xi1>, vector<16x32xf32>
    %14 = arith.mulf %7, %13 : vector<16x32xf32>
    %c0_7 = arith.constant 0 : index
    %c0_8 = arith.constant 0 : index
    %15 = vector.load %arg3[%c0_7, %c0_8] : memref<64x64xf32, #tpu.memory_space<vmem>>, vector<64x64xf32>
    %c0_9 = arith.constant 0 : index
    %c0_10 = arith.constant 0 : index
    %16 = vector.load %arg4[%c0_9, %c0_10] : memref<64x64xf32, #tpu.memory_space<vmem>>, vector<64x64xf32>
    %cst_11 = arith.constant dense<0.000000e+00> : vector<64x64xf32>
    %17 = tpu.matmul %15, %16, %cst_11 {dimension_numbers = #tpu.dot_dimension_numbers<[1], [0], [0], [1], [0, 0, 1, 1], [], []>} : vector<64x64xf32>, vector<64x64xf32>, vector<64x64xf32> -> vector<64x64xf32>
    %c0_12 = arith.constant 0 : index
    %c0_13 = arith.constant 0 : index
    %18 = vector.load %arg5[%c0_12, %c0_13] : memref<1x64xf32, #tpu.memory_space<vmem>>, vector<1x64xf32>
    %19 = vector.broadcast %18 : vector<1x64xf32> to vector<64x64xf32>
    %20 = arith.addf %17, %19 : vector<64x64xf32>
    %21 = vector.extract_strided_slice %20 {offsets = [0, 0], sizes = [64, 32], strides = [1, 1]} : vector<64x64xf32> to vector<64x32xf32>
    %22 = math.tanh %21 : vector<64x32xf32>
    %23 = vector.extract_strided_slice %20 {offsets = [0, 32], sizes = [64, 32], strides = [1, 1]} : vector<64x64xf32> to vector<64x32xf32>
    %cst_14 = arith.constant 0.000000e+00 : f32
    %24 = vector.broadcast %cst_14 : f32 to vector<64x32xf32>
    %25 = arith.cmpf ogt, %23, %24 : vector<64x32xf32>
    %cst_15 = arith.constant 0.00999999977 : f32
    %26 = vector.broadcast %cst_15 : f32 to vector<64x32xf32>
    %27 = arith.mulf %26, %23 : vector<64x32xf32>
    %28 = arith.select %25, %23, %27 : vector<64x32xi1>, vector<64x32xf32>
    %29 = arith.mulf %22, %28 : vector<64x32xf32>
    %30 = vector.shape_cast %14 : vector<16x32xf32> to vector<2x1x8x32xf32>
    %31 = vector.shape_cast %30 : vector<2x1x8x32xf32> to vector<2x1x8x32xf32>
    %32 = vector.broadcast %31 : vector<2x1x8x32xf32> to vector<2x4x8x32xf32>
    %33 = vector.shape_cast %32 : vector<2x4x8x32xf32> to vector<8x8x32xf32>
    %34 = vector.shape_cast %29 : vector<64x32xf32> to vector<8x8x32xf32>
    "tpu.trace_start"() <{level = 10 : i32, message = "bql,bhl->bqh"}> : () -> ()
    %cst_16 = arith.constant dense<0.000000e+00> : vector<8x8x8xf32>
    %35 = tpu.matmul %33, %34, %cst_16 {dimension_numbers = #tpu.dot_dimension_numbers<[2], [2], [1], [1], [0, 0, 0, 1, 1, 1], [0], [0]>} : vector<8x8x32xf32>, vector<8x8x32xf32>, vector<8x8x8xf32> -> vector<8x8x8xf32>
    "tpu.trace_stop"() : () -> ()
    %c0_17 = arith.constant 0 : index
    %c0_18 = arith.constant 0 : index
    %c0_19 = arith.constant 0 : index
    %36 = vector.load %arg7[%c0_17, %c0_18, %c0_19] : memref<8x1x8xf32, #tpu.memory_space<vmem>>, vector<8x1x8xf32>
    %37 = vector.broadcast %36 : vector<8x1x8xf32> to vector<8x8x8xf32>
    %38 = arith.mulf %35, %37 : vector<8x8x8xf32>
    %cst_20 = arith.constant 1.000000e+00 : f32
    %39 = vector.broadcast %cst_20 : f32 to vector<8x1x8xf32>
    %40 = arith.subf %36, %39 : vector<8x1x8xf32>
    %cst_21 = arith.constant 1.000000e+04 : f32
    %41 = vector.broadcast %cst_21 : f32 to vector<8x1x8xf32>
    %42 = arith.mulf %40, %41 : vector<8x1x8xf32>
    %43 = vector.broadcast %42 : vector<8x1x8xf32> to vector<8x8x8xf32>
    %44 = arith.addf %38, %43 : vector<8x8x8xf32>
    %cst_22 = arith.constant dense<0xFF800000> : vector<8x8xf32>
    %45 = vector.multi_reduction <maximumf>, %44, %cst_22 [2] : vector<8x8x8xf32> to vector<8x8xf32>
    %46 = vector.shape_cast %45 : vector<8x8xf32> to vector<8x8x1xf32>
    %47 = vector.broadcast %46 : vector<8x8x1xf32> to vector<8x8x8xf32>
    %48 = arith.subf %44, %47 : vector<8x8x8xf32>
    %49 = math.exp %48 : vector<8x8x8xf32>
    %cst_23 = arith.constant dense<0.000000e+00> : vector<8x8xf32>
    %50 = vector.multi_reduction <add>, %49, %cst_23 [2] : vector<8x8x8xf32> to vector<8x8xf32>
    %51 = vector.shape_cast %50 : vector<8x8xf32> to vector<8x8x1xf32>
    %52 = vector.broadcast %51 : vector<8x8x1xf32> to vector<8x8x8xf32>
    %53 = arith.divf %49, %52 : vector<8x8x8xf32>
    %c0_24 = arith.constant 0 : index
    %c0_25 = arith.constant 0 : index
    %c0_26 = arith.constant 0 : index
    %54 = vector.load %arg8[%c0_24, %c0_25, %c0_26] : memref<8x1x1xf32, #tpu.memory_space<vmem>>, vector<8x1x1xf32>
    %55 = vector.broadcast %54 : vector<8x1x1xf32> to vector<8x8x8xf32>
    %56 = arith.mulf %53, %55 : vector<8x8x8xf32>
    %c0_27 = arith.constant 0 : index
    %c0_28 = arith.constant 0 : index
    %c0_29 = arith.constant 0 : index
    %57 = vector.load %arg6[%c0_27, %c0_28, %c0_29] : memref<8x8x32xf32, #tpu.memory_space<vmem>>, vector<8x8x32xf32>
    "tpu.trace_start"() <{level = 10 : i32, message = "bqh,bhw->bqw"}> : () -> ()
    %cst_30 = arith.constant dense<0.000000e+00> : vector<8x8x32xf32>
    %58 = tpu.matmul %56, %57, %cst_30 {dimension_numbers = #tpu.dot_dimension_numbers<[2], [1], [1], [2], [0, 0, 0, 1, 1, 2], [0], [0]>} : vector<8x8x8xf32>, vector<8x8x32xf32>, vector<8x8x32xf32> -> vector<8x8x32xf32>
    "tpu.trace_stop"() : () -> ()
    %59 = vector.shape_cast %58 : vector<8x8x32xf32> to vector<2x4x8x32xf32>
    %cst_31 = arith.constant dense<0.000000e+00> : vector<2x8x32xf32>
    %60 = vector.multi_reduction <add>, %59, %cst_31 [1] : vector<2x4x8x32xf32> to vector<2x8x32xf32>
    %61 = vector.shape_cast %60 : vector<2x8x32xf32> to vector<16x32xf32>
    %c0_32 = arith.constant 0 : index
    %c0_33 = arith.constant 0 : index
    %62 = vector.load %arg9[%c0_32, %c0_33] : memref<16x64xf32, #tpu.memory_space<vmem>>, vector<16x64xf32>
    %c0_34 = arith.constant 0 : index
    %c0_35 = arith.constant 0 : index
    %63 = vector.load %arg10[%c0_34, %c0_35] : memref<32x64xf32, #tpu.memory_space<vmem>>, vector<32x64xf32>
    %cst_36 = arith.constant dense<0.000000e+00> : vector<16x64xf32>
    %64 = tpu.matmul %61, %63, %cst_36 {dimension_numbers = #tpu.dot_dimension_numbers<[1], [0], [0], [1], [0, 0, 1, 1], [], []>} : vector<16x32xf32>, vector<32x64xf32>, vector<16x64xf32> -> vector<16x64xf32>
    %65 = arith.addf %62, %64 : vector<16x64xf32>
    %c0_37 = arith.constant 0 : index
    %c0_38 = arith.constant 0 : index
    %66 = vector.load %arg11[%c0_37, %c0_38] : memref<64x64xf32, #tpu.memory_space<vmem>>, vector<64x64xf32>
    %cst_39 = arith.constant dense<0.000000e+00> : vector<16x64xf32>
    %67 = tpu.matmul %65, %66, %cst_39 {dimension_numbers = #tpu.dot_dimension_numbers<[1], [0], [0], [1], [0, 0, 1, 1], [], []>} : vector<16x64xf32>, vector<64x64xf32>, vector<16x64xf32> -> vector<16x64xf32>
    %c0_40 = arith.constant 0 : index
    %c0_41 = arith.constant 0 : index
    %68 = vector.load %arg12[%c0_40, %c0_41] : memref<1x64xf32, #tpu.memory_space<vmem>>, vector<1x64xf32>
    %69 = vector.broadcast %68 : vector<1x64xf32> to vector<16x64xf32>
    %70 = arith.addf %67, %69 : vector<16x64xf32>
    %cst_42 = arith.constant 0.000000e+00 : f32
    %71 = vector.broadcast %cst_42 : f32 to vector<16x64xf32>
    %72 = arith.subf %71, %70 : vector<16x64xf32>
    %73 = math.exp %72 : vector<16x64xf32>
    %cst_43 = arith.constant 1.000000e+00 : f32
    %74 = vector.broadcast %cst_43 : f32 to vector<16x64xf32>
    %75 = arith.addf %74, %73 : vector<16x64xf32>
    %cst_44 = arith.constant 1.000000e+00 : f32
    %76 = vector.broadcast %cst_44 : f32 to vector<16x64xf32>
    %77 = arith.divf %76, %75 : vector<16x64xf32>
    %78 = arith.mulf %77, %65 : vector<16x64xf32>
    %c0_45 = arith.constant 0 : index
    %c0_46 = arith.constant 0 : index
    %79 = vector.load %arg13[%c0_45, %c0_46] : memref<16x64xf32, #tpu.memory_space<vmem>>, vector<16x64xf32>
    tpu.vector_store %arg13[%c0_45, %c0_46], %78 {strides = array<i32>} : memref<16x64xf32, #tpu.memory_space<vmem>>, vector<16x64xf32>,
    return
  }
}

</mosaic_0001>

<bundles_post_ra>
// kernel: _topic_aggregation_impl.1
= control target key start
LH: loop header
LB: loop body
LE: loop exit
PB: predicated region body
PF: predicated region fallthrough
CT: control target
= control target key end

     0   :  { %s1812_s0 = inlined_call_operand.vmem [shape: f32[16,64], index: 0, kind: input, shape index: {}]   ;;  %s1813_s1 = inlined_call_operand.vmem [shape: f32[64,64], index: 1, kind: input, shape index: {}]   ;;  %s1814_s2 = inlined_call_operand.vmem [shape: f32[1,64], index: 2, kind: input, shape index: {}]   ;;  %s1815_s3 = inlined_call_operand.vmem [shape: f32[64,64], index: 3, kind: input, shape index: {}]   ;;  %s1816_s4 = inlined_call_operand.vmem [shape: f32[64,64], index: 4, kind: input, shape index: {}]   ;;  %s1817_s5 = inlined_call_operand.vmem [shape: f32[1,64], index: 5, kind: input, shape index: {}]   ;;  %s1818_s6 = inlined_call_operand.vmem [shape: f32[8,8,32], index: 6, kind: input, shape index: {}]   ;;  %s1819_s7 = inlined_call_operand.vmem [shape: f32[8,1,8], index: 7, kind: input, shape index: {}]   ;;  %s1820_s8 = inlined_call_operand.vmem [shape: f32[8,1,1], index: 8, kind: input, shape index: {}]   ;;  %s1821_s9 = inlined_call_operand.vmem [shape: f32[16,64], index: 9, kind: input, shape index: {}]   ;;  %s1822_s10 = inlined_call_operand.vmem [shape: f32[32,64], index: 10, kind: input, shape index: {}]   ;;  %s1823_s11 = inlined_call_operand.vmem [shape: f32[64,64], index: 11, kind: input, shape index: {}]   ;;  %s1824_s12 = inlined_call_operand.vmem [shape: f32[1,64], index: 12, kind: input, shape index: {}]   ;;  %s1825_s13 = inlined_call_operand.hbm [shape: f32[16,64], index: 13, kind: output, shape index: {}]  }
   0x1   :  { %v54_v0 = vld [vmem:[%s1813_s1 + $0x38] sm:$0xff]  ;;  %v53_v2 = vld [vmem:[%s1813_s1 + $0x30] sm:$0xff]  ;;  %v52_v4 = vld [vmem:[%s1813_s1 + $0x28] sm:$0xff] }
   0x2   :  { %v122_v1 = vld [vmem:[%s1816_s4 + $0x38] sm:$0xff]  ;;  %74 = vmatpush.msra.mxu0 %v54_v0  ;;  %v121_v3 = vld [vmem:[%s1816_s4 + $0x30] sm:$0xff]  ;;  %v120_v5 = vld [vmem:[%s1816_s4 + $0x28] sm:$0xff] }
   0x3   :  { %159 = vmatpush.msra.mxu1 %v122_v1  ;;  %v51_v6 = vld [vmem:[%s1813_s1 + $0x20] sm:$0xff]  ;;  %v50_v8 = vld [vmem:[%s1813_s1 + $0x18] sm:$0xff]  ;;  %v49_v10 = vld [vmem:[%s1813_s1 + $0x10] sm:$0xff] }
   0x4   :  { %75 = vmatpush.msra.mxu0 %v53_v2  ;;  %v119_v7 = vld [vmem:[%s1816_s4 + $0x20] sm:$0xff]  ;;  %v118_v9 = vld [vmem:[%s1816_s4 + $0x18] sm:$0xff]  ;;  %v117_v11 = vld [vmem:[%s1816_s4 + $0x10] sm:$0xff] }
   0x5   :  { %160 = vmatpush.msra.mxu1 %v121_v3  ;;  %v48_v12 = vld [vmem:[%s1813_s1 + $0x8] sm:$0xff] }
   0x6   :  { %76 = vmatpush.msra.mxu0 %v52_v4  ;;  %v116_v13 = vld [vmem:[%s1816_s4 + $0x8] sm:$0xff] }
   0x7   :  { %161 = vmatpush.msra.mxu1 %v120_v5 }
   0x8   :  { %77 = vmatpush.msra.mxu0 %v51_v6 }
   0x9   :  { %162 = vmatpush.msra.mxu1 %v119_v7 }
   0xa   :  { %78 = vmatpush.msra.mxu0 %v50_v8 }
   0xb   :  { %163 = vmatpush.msra.mxu1 %v118_v9 }
   0xc   :  { %79 = vmatpush.msra.mxu0 %v49_v10 }
   0xd   :  { %164 = vmatpush.msra.mxu1 %v117_v11 }
   0xe   :  { %18 = vsyncpa [#allocation3], 0  ;;  %v47_v14 = vld [vmem:[%s1813_s1] sm:$0xff]  ;;  %80 = vmatpush.msra.mxu0 %v48_v12  ;;  %vm59_vm0 = vcmask 523264   ;;  %v108_v18 = vld [vmem:[%s1815_s3 + $0x8] sm:$0xff]  ;;  %vm264_vm11 = vcmask 261120  }
   0xf   :  { %v115_v15 = vld [vmem:[%s1816_s4] sm:$0xff]  ;;  %165 = vmatpush.msra.mxu1 %v116_v13  ;;  %v46_v19 = vld [vmem:[%s1812_s0 + $0x8] sm:$0xff]  ;;  %v109_v20 = vld [vmem:[%s1815_s3 + $0x10] sm:$0xff]  ;;  %vm543_vm12 = vcmask 64512   ;;  %s1132_s23 = sshll.u32 %s1825_s13, 4  ;;  %s1306_s24 = smov 128   ;;  %s1133_s23 = int_to_ptr.hbm [resolvable:$true] %s1132_s23 }
  0x10   :  { %v45_v16 = vld [vmem:[%s1812_s0] sm:$0xff]  ;;  %81 = vmatpush.msra.mxu0 %v47_v14  ;;  %v110_v21 = vld [vmem:[%s1815_s3 + $0x18] sm:$0xff]  ;;  %v112_v23 = vld [vmem:[%s1815_s3 + $0x28] sm:$0xff]  ;;  %s1307_s25 = smov 8  }
  0x11   :  { %v107_v17 = vld [vmem:[%s1815_s3] sm:$0xff]  ;;  %166 = vmatpush.msra.mxu1 %v115_v15  ;;  %1144 = vmatmul.msk.f32.vlgmr.msra.gmra.mxu0 %vm59_vm0, %v45_v16  ;;  %v113_v24 = vld [vmem:[%s1815_s3 + $0x30] sm:$0xff]  ;;  %v114_v25 = vld [vmem:[%s1815_s3 + $0x38] sm:$0xff] }
  0x12   :  { %1146 = vmatmul.msk.f32.vlgmr.msra.gmra.mxu1 %vm59_vm0, %v107_v17  ;;  %v111_v22 = vld [vmem:[%s1815_s3 + $0x20] sm:$0xff]  ;;  %s1303_s3 = smov 96  }
  0x13   :  { %v1198_v26 = vld [vmem:[%s1814_s2] ss:$0 sm:$0xff] }
  0x14   :  { %v1199_v27 = vld [vmem:[%s1817_s5] ss:$0 sm:$0xff] }
  0x19   :  { %1145 = vmatmul.msk.f32.gmra.mxu0 %vm59_vm0, %v46_v19 }
  0x1a   :  { %1147 = vmatmul.msk.f32.gmra.mxu1 %vm59_vm0, %v108_v18 }
  0x22   :  { %1148 = vmatmul.msk.f32.gmra.mxu1 %vm59_vm0, %v109_v20 }
  0x2a   :  { %1149 = vmatmul.msk.f32.gmra.mxu1 %vm59_vm0, %v110_v21 }
  0x32   :  { %1150 = vmatmul.msk.f32.gmra.mxu1 %vm59_vm0, %v111_v22 }
  0x3a   :  { %1151 = vmatmul.msk.f32.gmra.mxu1 %vm59_vm0, %v112_v23 }
  0x42   :  { %1152 = vmatmul.msk.f32.gmra.mxu1 %vm59_vm0, %v113_v24 }
  0x4a   :  { %1153 = vmatmul.msk.f32.gmra.mxu1 %vm59_vm0, %v114_v25 }
  0x8e   :  { %v83_v28 = vpop.f32.mrf.mxu0 }
  0x8f   :  { %v168_v29 = vpop.f32.mrf.mxu1  ;;  %v84_v30 = vadd.f32 %v1198_v26, %v83_v28 }
  0x90   :  { %v169_v31 = vadd.f32 %v1199_v27, %v168_v29 }
  0x91   :  { %vm91_vm2 = vcmp.gt.f32.partialorder %v84_v30, 0.0  ;;  %v93_v33 = vmul.f32 0.01, %v84_v30 }
  0x92   :  { %vm200_vm1 = vcmp.gt.f32.partialorder %v169_v31, 0.0  ;;  %v208_v32 = vmul.f32 0.01, %v169_v31  ;;  %1217 = vtanh.f32 %v169_v31 }
  0x93   :  { %v95_v35 = vsel %vm91_vm2, %v84_v30, %v93_v33  ;;  %1219 = vtanh.f32 %v84_v30 }
  0x94   :  { %v216_v34 = vsel %vm200_vm1, %v169_v31, %v208_v32  ;;  %99 = vrot.lane.b32.xlu1 %v95_v35, %s1303_s3 }
  0x95   :  { %232 = vrot.lane.b32.xlu0 %v216_v34, %s1303_s3  ;;  %v455_v34 = vld [vmem:[%s1819_s7] sm:$0x1] }
  0x96   :  { %v86_v41 = vpop.f32.mrf.mxu0  ;;  %v1170_v35 = vadd.f32 -1.0, %v455_v34 }
  0x97   :  { %v171_v36 = vpop.f32.mrf.mxu1  ;;  %v1475_v44 = vadd.f32 %v1198_v26, %v86_v41 }
  0x98   :  { %v172_v37 = vadd.f32 %v1199_v27, %v171_v36  ;;  %v1218_v4 = vpop.eup %1217  ;;  %v503_v36 = vmul.f32 10000.0, %v1170_v35 }
  0x99   :  { %v94_v46 = vmul.f32 0.01, %v1475_v44  ;;  %vm92_vm5 = vcmp.gt.f32.partialorder %v1475_v44, 0.0  ;;  %v1220_v8 = vpop.eup %1219 }
  0x9a   :  { %vm201_vm3 = vcmp.gt.f32.partialorder %v172_v37, 0.0  ;;  %v209_v38 = vmul.f32 0.01, %v172_v37  ;;  %1221 = vtanh.f32 %v172_v37 }
  0x9b   :  { %v96_v50 = vsel %vm92_vm5, %v1475_v44, %v94_v46  ;;  %v458_v46 = vld [vmem:[%s1819_s7 + $0x3] sm:$0x1] }
  0x9c   :  { %v217_v39 = vsel %vm201_vm3, %v172_v37, %v209_v38  ;;  %v456_v37 = vld [vmem:[%s1819_s7 + $0x1] sm:$0x1]  ;;  %v1200_v38 = vld [vmem:[%s1819_s7] ss:$0 sm:$0xff] }
  0x9d   :  { %234 = vrot.lane.b32.xlu0 %v217_v39, %s1303_s3  ;;  %v519_v39 = vperm.slane %v503_v36, 0 }
  0x9f   :  { %v174_v40 = vpop.f32.mrf.mxu1 }
  0xa0   :  { %v175_v42 = vadd.f32 %v1199_v27, %v174_v40  ;;  %v1222_v11 = vpop.eup %1221  ;;  %v1171_v40 = vadd.f32 -1.0, %v456_v37 }
  0xa2   :  { %vm202_vm4 = vcmp.gt.f32.partialorder %v175_v42, 0.0  ;;  %v210_v43 = vmul.f32 0.01, %v175_v42 }
  0xa4   :  { %v218_v45 = vsel %vm202_vm4, %v175_v42, %v210_v43 }
  0xa5   :  { %236 = vrot.lane.b32.xlu1 %v218_v45, %s1303_s3  ;;  %v457_v45 = vld [vmem:[%s1819_s7 + $0x2] sm:$0x1] }
  0xa7   :  { %v177_v47 = vpop.f32.mrf.mxu1 }
  0xa8   :  { %v178_v48 = vadd.f32 %v1199_v27, %v177_v47 }
  0xaa   :  { %vm203_vm6 = vcmp.gt.f32.partialorder %v178_v48, 0.0  ;;  %v211_v49 = vmul.f32 0.01, %v178_v48  ;;  %1223 = vtanh.f32 %v178_v48 }
  0xab   :  { %1225 = vtanh.f32 %v175_v42 }
  0xac   :  { %v219_v51 = vsel %vm203_vm6, %v178_v48, %v211_v49  ;;  %v1201_v48 = vld [vmem:[%s1819_s7 + $0x1] ss:$0 sm:$0xff] }
  0xad   :  { %238 = vrot.lane.b32.xlu2 %v219_v51, %s1303_s3  ;;  %101 = vrot.lane.b32.xlu1 %v96_v50, %s1303_s3  ;;  %v1172_v50 = vadd.f32 -1.0, %v457_v45  ;;  %v1173_v51 = vadd.f32 -1.0, %v458_v46 }
  0xaf   :  { %v180_v52 = vpop.f32.mrf.mxu1 }
  0xb0   :  { %v181_v53 = vadd.f32 %v1199_v27, %v180_v52  ;;  %v1224_v13 = vpop.eup %1223 }
  0xb1   :  { %v1226_v17 = vpop.eup %1225 }
  0xb2   :  { %vm204_vm7 = vcmp.gt.f32.partialorder %v181_v53, 0.0  ;;  %v212_v54 = vmul.f32 0.01, %v181_v53  ;;  %1227 = vtanh.f32 %v181_v53 }
  0xb3   :  { %1229 = vtanh.f32 %v1475_v44  ;;  %v504_v44 = vmul.f32 10000.0, %v1171_v40 }
  0xb4   :  { %v220_v55 = vsel %vm204_vm7, %v181_v53, %v212_v54 }
  0xb5   :  { %240 = vrot.lane.b32.xlu2 %v220_v55, %s1303_s3  ;;  %v520_v49 = vperm.slane %v504_v44, 0  ;;  %v506_v55 = vmul.f32 10000.0, %v1173_v51  ;;  %v1208_v44 = vld [vmem:[%s1820_s8] ss:$0 sm:$0xff] }
  0xb7   :  { %v183_v56 = vpop.f32.mrf.mxu1 }
  0xb8   :  { %v184_v57 = vadd.f32 %v1199_v27, %v183_v56  ;;  %v1228_v19 = vpop.eup %1227  ;;  %v505_v56 = vmul.f32 10000.0, %v1172_v50 }
  0xb9   :  { %v1230_v23 = vpop.eup %1229 }
  0xba   :  { %vm205_vm8 = vcmp.gt.f32.partialorder %v184_v57, 0.0  ;;  %v213_v58 = vmul.f32 0.01, %v184_v57  ;;  %1231 = vtanh.f32 %v184_v57 }
  0xbc   :  { %v221_v59 = vsel %vm205_vm8, %v184_v57, %v213_v58  ;;  %v459_v57 = vld [vmem:[%s1819_s7 + $0x4] sm:$0x1] }
  0xbd   :  { %242 = vrot.lane.b32.xlu0 %v221_v59, %s1303_s3  ;;  %v1202_v59 = vld [vmem:[%s1819_s7 + $0x2] ss:$0 sm:$0xff] }
  0xbf   :  { %v186_v60 = vpop.f32.mrf.mxu1 }
  0xc0   :  { %v187_v61 = vadd.f32 %v1199_v27, %v186_v60  ;;  %v1232_v26 = vpop.eup %1231  ;;  %v1203_v60 = vld [vmem:[%s1819_s7 + $0x3] ss:$0 sm:$0xff] }
  0xc2   :  { %vm206_vm9 = vcmp.gt.f32.partialorder %v187_v61, 0.0  ;;  %v214_v62 = vmul.f32 0.01, %v187_v61 }
  0xc4   :  { %v222_v63 = vsel %vm206_vm9, %v187_v61, %v214_v62  ;;  %v521_v62 = vperm.slane %v505_v56, 0 }
  0xc5   :  { %244 = vrot.lane.b32.xlu0 %v222_v63, %s1303_s3  ;;  %v1174_v63 = vadd.f32 -1.0, %v459_v57 }
  0xc7   :  { %v189_v0 = vpop.f32.mrf.mxu1 }
  0xc8   :  { %v190_v1 = vadd.f32 %v1199_v27, %v189_v0 }
  0xca   :  { %vm207_vm10 = vcmp.gt.f32.partialorder %v190_v1, 0.0  ;;  %v215_v2 = vmul.f32 0.01, %v190_v1  ;;  %1233 = vtanh.f32 %v190_v1 }
  0xcb   :  { %1235 = vtanh.f32 %v187_v61  ;;  %v522_v61 = vperm.slane %v506_v55, 0 }
  0xcc   :  { %v223_v3 = vsel %vm207_vm10, %v190_v1, %v215_v2 }
  0xcd   :  { %246 = vrot.lane.b32.xlu2 %v223_v3, %s1303_s3 }
  0xd0   :  { %v1234_v28 = vpop.eup %1233 }
  0xd1   :  { %v1236_v31 = vpop.eup %1235 }
 0x106   :  { %v100_v7 = vpop.permute.xlu1 %99 }
 0x107   :  { %v233_v5 = vpop.permute.xlu0 %232  ;;  %v105_v9 = vmul.f32 %v1220_v8, %v100_v7  ;;  %v239_v10 = vpop.permute.xlu2 %238 }
 0x108   :  { %v256_v6 = vmul.f32 %v1218_v4, %v233_v5  ;;  %v259_v15 = vmul.f32 %v1224_v13, %v239_v10 }
 0x10a   :  { %1154 = vmatpush.xpose.msk.msra.mxu2 %vm264_vm11, %v256_v6  ;;  %v507_v6 = vmul.f32 10000.0, %v1174_v63 }
 0x10c   :  { %v523_v10 = vperm.slane %v507_v6, 0 }
 0x10d   :  { %1155 = vmatmul.msk.f32.vlgmr.msra.gmra.mxu2 %vm264_vm11, %v105_v9 }
 0x10f   :  { %v235_v12 = vpop.permute.xlu0 %234  ;;  %v241_v16 = vpop.permute.xlu2 %240 }
 0x110   :  { %v257_v14 = vmul.f32 %v1222_v11, %v235_v12  ;;  %v260_v21 = vmul.f32 %v1228_v19, %v241_v16  ;;  %v1304_v11 = vmov 0   ;;  %v461_v19 = vld [vmem:[%s1819_s7 + $0x6] sm:$0x1] }
 0x111   :  { %1195 = vset.pattern.permute.xlu2 %v1304_v11  ;;  %1196 = vset.pattern.permute.xlu0 %v1304_v11 }
 0x112   :  { %1156 = vmatpush.xpose.msk.msra.mxu3 %vm264_vm11, %v257_v14  ;;  %1197 = vset.pattern.permute.xlu1 %v1304_v11 }
 0x115   :  { %1157 = vmatmul.msk.f32.vlgmr.msra.gmra.mxu3 %vm264_vm11, %v105_v9 }
 0x116   :  { %1160 = vmatpush.xpose.msk.msrb.mxu3 %vm264_vm11, %v259_v15  ;;  %v460_v15 = vld [vmem:[%s1819_s7 + $0x5] sm:$0x1] }
 0x117   :  { %v237_v18 = vpop.permute.xlu1 %236 }
 0x118   :  { %v258_v20 = vmul.f32 %v1226_v17, %v237_v18  ;;  %v1175_v17 = vadd.f32 -1.0, %v460_v15 }
 0x11a   :  { %1158 = vmatpush.xpose.msk.msrb.mxu2 %vm264_vm11, %v258_v20  ;;  %v508_v18 = vmul.f32 10000.0, %v1175_v17  ;;  %v462_v20 = vld [vmem:[%s1819_s7 + $0x7] sm:$0x1] }
 0x11d   :  { %1159 = vmatmul.msk.f32.vlgmr.msrb.gmra.mxu2 %vm264_vm11, %v105_v9  ;;  %1161 = vmatmul.msk.f32.vlgmr.msrb.gmra.mxu3 %vm264_vm11, %v105_v9  ;;  %v1204_v9 = vld [vmem:[%s1819_s7 + $0x4] ss:$0 sm:$0xff] }
 0x11e   :  { %1162 = vmatpush.xpose.msk.msra.mxu2 %vm264_vm11, %v260_v21  ;;  %v1205_v21 = vld [vmem:[%s1819_s7 + $0x5] ss:$0 sm:$0xff] }
 0x11f   :  { %v102_v22 = vpop.permute.xlu1 %101 }
 0x120   :  { %v106_v24 = vmul.f32 %v1230_v23, %v102_v22  ;;  %v524_v22 = vperm.slane %v508_v18, 0  ;;  %v1176_v23 = vadd.f32 -1.0, %v461_v19 }
 0x125   :  { %1163 = vmatmul.msk.f32.vlgmr.msra.gmra.mxu2 %vm264_vm11, %v106_v24 }
 0x127   :  { %v247_v25 = vpop.permute.xlu2 %246 }
 0x128   :  { %v263_v30 = vmul.f32 %v1234_v28, %v247_v25 }
 0x12f   :  { %v243_v27 = vpop.permute.xlu0 %242 }
 0x130   :  { %v261_v29 = vmul.f32 %v1232_v26, %v243_v27 }
 0x132   :  { %1164 = vmatpush.xpose.msk.msra.mxu3 %vm264_vm11, %v261_v29  ;;  %v509_v29 = vmul.f32 10000.0, %v1176_v23  ;;  %v1212_v23 = vld [vmem:[%s1820_s8 + $0x1] ss:$0 sm:$0xff] }
 0x134   :  { %v525_v34 = vperm.slane %v509_v29, 0 }
 0x135   :  { %1165 = vmatmul.msk.f32.vlgmr.msra.gmra.mxu3 %vm264_vm11, %v106_v24 }
 0x136   :  { %1168 = vmatpush.xpose.msk.msrb.mxu3 %vm264_vm11, %v263_v30 }
 0x137   :  { %v245_v32 = vpop.permute.xlu0 %244 }
 0x138   :  { %v262_v33 = vmul.f32 %v1236_v31, %v245_v32  ;;  %v1206_v31 = vld [vmem:[%s1819_s7 + $0x6] ss:$0 sm:$0xff]  ;;  %v1207_v32 = vld [vmem:[%s1819_s7 + $0x7] ss:$0 sm:$0xff] }
 0x13a   :  { %1166 = vmatpush.xpose.msk.msrb.mxu2 %vm264_vm11, %v262_v33 }
 0x13d   :  { %1167 = vmatmul.msk.f32.vlgmr.msrb.gmra.mxu2 %vm264_vm11, %v106_v24  ;;  %1169 = vmatmul.msk.f32.vlgmr.msrb.gmra.mxu3 %vm264_vm11, %v106_v24  ;;  %v1177_v24 = vadd.f32 -1.0, %v462_v20 }
 0x13f   :  { %v510_v28 = vmul.f32 10000.0, %v1177_v24  ;;  %v1213_v24 = vld [vmem:[%s1820_s8 + $0x2] ss:$0 sm:$0xff] }
 0x141   :  { %v526_v33 = vperm.slane %v510_v28, 0 }
 0x190   :  { %v288_v41 = vpop.f32.mrf.mxu2 }
 0x191   :  { %v487_v42 = vmul.f32 %v1200_v38, %v288_v41 }
 0x193   :  { %v1513_v43 = vadd.f32 %v519_v39, %v487_v42 }
 0x195   :  { %v544_v47 = vsel %vm543_vm12, %v1513_v43, -inf }
 0x196   :  { %545 = vmax.xlane.f32.xlu1 %v544_v47 }
 0x198   :  { %v311_v52 = vpop.f32.mrf.mxu3 }
 0x199   :  { %v488_v53 = vmul.f32 %v1201_v48, %v311_v52 }
 0x19b   :  { %v1526_v54 = vadd.f32 %v520_v49, %v488_v53 }
 0x19d   :  { %v547_v58 = vsel %vm543_vm12, %v1526_v54, -inf }
 0x19e   :  { %548 = vmax.xlane.f32.xlu2 %v547_v58 }
 0x1a0   :  { %v334_v0 = vpop.f32.mrf.mxu2  ;;  %v357_v1 = vpop.f32.mrf.mxu3 }
 0x1a1   :  { %v489_v2 = vmul.f32 %v1202_v59, %v334_v0  ;;  %v490_v3 = vmul.f32 %v1203_v60, %v357_v1 }
 0x1a3   :  { %v1539_v4 = vadd.f32 %v522_v61, %v490_v3  ;;  %v1541_v5 = vadd.f32 %v521_v62, %v489_v2 }
 0x1a5   :  { %v553_v7 = vsel %vm543_vm12, %v1539_v4, -inf  ;;  %v550_v8 = vsel %vm543_vm12, %v1541_v5, -inf }
 0x1a6   :  { %554 = vmax.xlane.f32.xlu1 %v553_v7  ;;  %551 = vmax.xlane.f32.xlu0 %v550_v8 }
 0x1a8   :  { %v383_v12 = vpop.f32.mrf.mxu2 }
 0x1a9   :  { %v491_v13 = vmul.f32 %v1204_v9, %v383_v12 }
 0x1ab   :  { %v539_v14 = vadd.f32 %v523_v10, %v491_v13 }
 0x1ad   :  { %v556_v16 = vsel %vm543_vm12, %v539_v14, -inf }
 0x1ae   :  { %557 = vmax.xlane.f32.xlu2 %v556_v16  ;;  %v1209_v16 = vld [vmem:[%s1820_s8 + $0x4] ss:$0 sm:$0xff] }
 0x1b8   :  { %v406_v25 = vpop.f32.mrf.mxu3 }
 0x1b9   :  { %v492_v26 = vmul.f32 %v1205_v21, %v406_v25  ;;  %v1210_v21 = vld [vmem:[%s1820_s8 + $0x3] ss:$0 sm:$0xff]  ;;  %v1214_v25 = vld [vmem:[%s1820_s8 + $0x5] ss:$0 sm:$0xff] }
 0x1bb   :  { %v540_v27 = vadd.f32 %v524_v22, %v492_v26  ;;  %v1211_v22 = vld [vmem:[%s1820_s8 + $0x7] ss:$0 sm:$0xff]  ;;  %v1215_v26 = vld [vmem:[%s1820_s8 + $0x6] ss:$0 sm:$0xff] }
 0x1bd   :  { %v559_v30 = vsel %vm543_vm12, %v540_v27, -inf }
 0x1be   :  { %560 = vmax.xlane.f32.xlu2 %v559_v30 }
 0x1c0   :  { %v429_v35 = vpop.f32.mrf.mxu2  ;;  %v452_v36 = vpop.f32.mrf.mxu3 }
 0x1c1   :  { %v493_v37 = vmul.f32 %v1206_v31, %v429_v35  ;;  %v494_v38 = vmul.f32 %v1207_v32, %v452_v36  ;;  %v803_v35 = vld [vmem:[%s1818_s6 + $0x18] sm:$0xff] }
 0x1c2   :  { %895 = vmatpush.msrb.mxu0 %v803_v35 }
 0x1c3   :  { %v542_v39 = vadd.f32 %v526_v33, %v494_v38  ;;  %v541_v40 = vadd.f32 %v525_v34, %v493_v37 }
 0x1c5   :  { %v565_v41 = vsel %vm543_vm12, %v542_v39, -inf  ;;  %v562_v42 = vsel %vm543_vm12, %v541_v40, -inf }
 0x1c6   :  { %566 = vmax.xlane.f32.xlu0 %v565_v41  ;;  %563 = vmax.xlane.f32.xlu1 %v562_v42 }
 0x1d6   :  { %761 = vperm.xlu2 %1195, %v1208_v44  }
 0x209   :  { %v546_v45 = vpop.xlane.xlu1 %545 }
 0x20a   :  { %v568_v46 = vsub.f32 %v1513_v43, %v546_v45 }
 0x20c   :  { %v576_v47 = vmul.f32 1.442695, %v568_v46 }
 0x20e   :  { %1237 = vpow2.f32 %v576_v47 }
 0x211   :  { %v549_v48 = vpop.xlane.xlu2 %548 }
 0x212   :  { %v569_v49 = vsub.f32 %v1526_v54, %v549_v48 }
 0x214   :  { %v1577_v50 = vpop.eup %1237  ;;  %v578_v51 = vmul.f32 1.442695, %v569_v49 }
 0x215   :  { %v592_v52 = vsel %vm543_vm12, %v1577_v50, 0.0 }
 0x216   :  { %1239 = vpow2.f32 %v578_v51  ;;  %593 = vadd.xlane.f32.xlu2 %v592_v52 }
 0x219   :  { %v555_v53 = vpop.xlane.xlu1 %554  ;;  %v552_v55 = vpop.xlane.xlu0 %551 }
 0x21a   :  { %v571_v56 = vsub.f32 %v1539_v4, %v555_v53  ;;  %v570_v57 = vsub.f32 %v1541_v5, %v552_v55 }
 0x21c   :  { %v1583_v43 = vpop.eup %1239  ;;  %v582_v58 = vmul.f32 1.442695, %v571_v56  ;;  %v580_v59 = vmul.f32 1.442695, %v570_v57 }
 0x21d   :  { %v595_v54 = vsel %vm543_vm12, %v1583_v43, 0.0 }
 0x21e   :  { %1241 = vpow2.f32 %v582_v58  ;;  %596 = vadd.xlane.f32.xlu0 %v595_v54  ;;  %v801_v54 = vld [vmem:[%s1818_s6 + $0x8] sm:$0xff] }
 0x21f   :  { %1243 = vpow2.f32 %v580_v59 }
 0x221   :  { %v558_v60 = vpop.xlane.xlu2 %557 }
 0x222   :  { %v572_v61 = vsub.f32 %v539_v14, %v558_v60  ;;  %v802_v60 = vld [vmem:[%s1818_s6 + $0x10] sm:$0xff] }
 0x223   :  { %872 = vmatpush.msra.mxu3 %v802_v60 }
 0x224   :  { %v1587_v62 = vpop.eup %1241  ;;  %v584_v63 = vmul.f32 1.442695, %v572_v61 }
 0x225   :  { %v1589_v0 = vpop.eup %1243  ;;  %v601_v1 = vsel %vm543_vm12, %v1587_v62, 0.0 }
 0x226   :  { %1245 = vpow2.f32 %v584_v63  ;;  %602 = vadd.xlane.f32.xlu0 %v601_v1  ;;  %v598_v2 = vsel %vm543_vm12, %v1589_v0, 0.0 }
 0x227   :  { %599 = vadd.xlane.f32.xlu1 %v598_v2 }
 0x22c   :  { %v1595_v3 = vpop.eup %1245 }
 0x22d   :  { %v604_v4 = vsel %vm543_vm12, %v1595_v3, 0.0 }
 0x22e   :  { %605 = vadd.xlane.f32.xlu2 %v604_v4 }
 0x231   :  { %v561_v5 = vpop.xlane.xlu2 %560 }
 0x232   :  { %v573_v6 = vsub.f32 %v540_v27, %v561_v5  ;;  %v800_v27 = vld [vmem:[%s1818_s6] sm:$0xff] }
 0x233   :  { %826 = vmatpush.msra.mxu2 %v800_v27 }
 0x234   :  { %v586_v7 = vmul.f32 1.442695, %v573_v6  ;;  %v804_v6 = vld [vmem:[%s1818_s6 + $0x20] sm:$0xff] }
 0x235   :  { %849 = vmatpush.msrb.mxu2 %v801_v54 }
 0x236   :  { %1247 = vpow2.f32 %v586_v7 }
 0x239   :  { %v567_v8 = vpop.xlane.xlu0 %566  ;;  %v564_v9 = vpop.xlane.xlu1 %563 }
 0x23a   :  { %v575_v10 = vsub.f32 %v542_v39, %v567_v8  ;;  %v574_v11 = vsub.f32 %v541_v40, %v564_v9  ;;  %v762_v28 = vpop.permute.xlu2 %761  ;;  %v805_v8 = vld [vmem:[%s1818_s6 + $0x28] sm:$0xff] }
 0x23b   :  { %941 = vmatpush.msrb.mxu3 %v805_v8 }
 0x23c   :  { %v1599_v12 = vpop.eup %1247  ;;  %v590_v13 = vmul.f32 1.442695, %v575_v10  ;;  %v588_v14 = vmul.f32 1.442695, %v574_v11 }
 0x23d   :  { %v607_v15 = vsel %vm543_vm12, %v1599_v12, 0.0 }
 0x23e   :  { %1249 = vpow2.f32 %v590_v13  ;;  %608 = vadd.xlane.f32.xlu1 %v607_v15 }
 0x23f   :  { %1251 = vpow2.f32 %v588_v14 }
 0x244   :  { %v1606_v17 = vpop.eup %1249 }
 0x245   :  { %v1608_v18 = vpop.eup %1251  ;;  %v613_v19 = vsel %vm543_vm12, %v1606_v17, 0.0 }
 0x246   :  { %614 = vadd.xlane.f32.xlu0 %v613_v19  ;;  %777 = vperm.xlu2 %1195, %v1209_v16   ;;  %v610_v20 = vsel %vm543_vm12, %v1608_v18, 0.0 }
 0x247   :  { %611 = vadd.xlane.f32.xlu1 %v610_v20 }
 0x24e   :  { %773 = vperm.xlu2 %1195, %v1210_v21  }
 0x256   :  { %789 = vperm.xlu2 %1195, %v1211_v22   ;;  %v806_v22 = vld [vmem:[%s1818_s6 + $0x30] sm:$0xff] }
 0x257   :  { %964 = vmatpush.msra.mxu0 %v806_v22 }
 0x25a   :  { %765 = vperm.xlu0 %1196, %v1212_v23  }
 0x260   :  { %769 = vperm.xlu1 %1197, %v1213_v24  }
 0x268   :  { %781 = vperm.xlu1 %1197, %v1214_v25  }
 0x270   :  { %785 = vperm.xlu1 %1197, %v1215_v26  }
 0x289   :  { %v594_v29 = vpop.xlane.xlu2 %593 }
 0x28a   :  { %1253 = vrcp.f32 %v594_v29  ;;  %v627_v34 = vand.u32 2147483648, %v594_v29  ;;  %v625_v37 = vand.u32 2147483647, %v594_v29  ;;  %vm621_vm14 = vweird.f32 %v594_v29 }
 0x28c   :  { %v628_v39 = vor.u32 1.1754944e-38, %v627_v34  ;;  %vm626_vm1 = vcmp.eq.f32.partialorder %v625_v37, 8.507059e+37 }
 0x290   :  { %v1254_v30 = vpop.eup %1253 }
 0x291   :  { %v617_v31 = vmul.f32 %v1254_v30, %v594_v29  ;;  %v1635_v32 = vpop.xlane.xlu0 %596  ;;  %vm622_vm13 = vweird.f32 %v1254_v30 }
 0x292   :  { %vm623_vm15 = vmor %vm621_vm14, %vm622_vm13  ;;  %v642_v24 = vand.u32 2147483648, %v1635_v32  ;;  %vm636_vm7 = vweird.f32 %v1635_v32  ;;  %v640_v25 = vand.u32 2147483647, %v1635_v32 }
 0x293   :  { %v618_v33 = vsub.f32 1.0, %v617_v31 }
 0x294   :  { %v643_v31 = vor.u32 1.1754944e-38, %v642_v24  ;;  %vm641_vm9 = vcmp.eq.f32.partialorder %v640_v25, 8.507059e+37 }
 0x295   :  { %v619_v36 = vmul.f32 %v1254_v30, %v618_v33 }
 0x297   :  { %v620_v38 = vadd.f32 %v1254_v30, %v619_v36 }
 0x299   :  { %v624_v40 = vsel %vm623_vm15, %v1254_v30, %v620_v38  ;;  %v603_v41 = vpop.xlane.xlu0 %602 }
 0x29a   :  { %v629_v42 = vsel %vm626_vm1, %v628_v39, %v624_v40  ;;  %1255 = vrcp.f32 %v603_v41  ;;  %v672_v53 = vand.u32 2147483648, %v603_v41  ;;  %vm666_vm3 = vweird.f32 %v603_v41  ;;  %v1647_v58 = vpop.xlane.xlu1 %599 }
 0x29b   :  { %v630_v44 = vmul.f32 %v1577_v50, %v629_v42  ;;  %v670_v55 = vand.u32 2147483647, %v603_v41  ;;  %1257 = vrcp.f32 %v1635_v32  ;;  %v657_v35 = vand.u32 2147483648, %v1647_v58 }
 0x29c   :  { %v673_v57 = vor.u32 1.1754944e-38, %v672_v53  ;;  %1259 = vrcp.f32 %v1647_v58  ;;  %vm651_vm14 = vweird.f32 %v1647_v58  ;;  %v655_v40 = vand.u32 2147483647, %v1647_v58 }
 0x29d   :  { %v792_v45 = vmul.f32 %v762_v28, %v630_v44  ;;  %vm671_vm5 = vcmp.eq.f32.partialorder %v670_v55, 8.507059e+37 }
 0x29f   :  { %1178 = vmatmul.msk.f32.vlgmr.msra.gmra.mxu2 %vm543_vm12, %v792_v45 }
 0x2a0   :  { %v1256_v46 = vpop.eup %1255  ;;  %918 = vmatpush.msra.mxu2 %v804_v6 }
 0x2a1   :  { %v662_v47 = vmul.f32 %v1256_v46, %v603_v41  ;;  %v1642_v48 = vpop.xlane.xlu2 %605  ;;  %vm667_vm2 = vweird.f32 %v1256_v46  ;;  %v1258_v61 = vpop.eup %1257 }
 0x2a2   :  { %vm668_vm4 = vmor %vm666_vm3, %vm667_vm2  ;;  %1261 = vrcp.f32 %v1642_v48  ;;  %v632_v4 = vmul.f32 %v1258_v61, %v1635_v32  ;;  %v1260_v7 = vpop.eup %1259  ;;  %vm637_vm6 = vweird.f32 %v1258_v61  ;;  %v687_v39 = vand.u32 2147483648, %v1642_v48 }
 0x2a3   :  { %v663_v49 = vsub.f32 1.0, %v662_v47  ;;  %v647_v11 = vmul.f32 %v1260_v7, %v1647_v58  ;;  %vm638_vm8 = vmor %vm636_vm7, %vm637_vm6  ;;  %vm652_vm10 = vweird.f32 %v1260_v7  ;;  %vm681_vm15 = vweird.f32 %v1642_v48 }
 0x2a4   :  { %v685_v41 = vand.u32 2147483647, %v1642_v48  ;;  %vm653_vm1 = vmor %vm651_vm14, %vm652_vm10  ;;  %vm656_vm3 = vcmp.eq.f32.partialorder %v655_v40, 8.507059e+37 }
 0x2a5   :  { %v664_v51 = vmul.f32 %v1256_v46, %v663_v49  ;;  %v648_v15 = vsub.f32 1.0, %v647_v11 }
 0x2a7   :  { %v665_v52 = vadd.f32 %v1256_v46, %v664_v51  ;;  %v649_v26 = vmul.f32 %v1260_v7, %v648_v15 }
 0x2a8   :  { %v1262_v9 = vpop.eup %1261 }
 0x2a9   :  { %v1644_v56 = vpop.permute.xlu2 %777  ;;  %v669_v50 = vsel %vm668_vm4, %v1256_v46, %v665_v52  ;;  %v677_v14 = vmul.f32 %v1262_v9, %v1642_v48  ;;  %v650_v34 = vadd.f32 %v1260_v7, %v649_v26  ;;  %vm682_vm13 = vweird.f32 %v1262_v9 }
 0x2aa   :  { %v674_v59 = vsel %vm671_vm5, %v673_v57, %v669_v50  ;;  %vm1699_vm2 = vmor %vm681_vm15, %vm682_vm13  ;;  %v658_v46 = vor.u32 1.1754944e-38, %v657_v35  ;;  %v688_v48 = vor.u32 1.1754944e-38, %v687_v39  ;;  %vm686_vm4 = vcmp.eq.f32.partialorder %v685_v41, 8.507059e+37  ;;  %v1048_v35 = vld [vmem:[%s1823_s11 + $0x28] sm:$0xff] }
 0x2ab   :  { %v675_v63 = vmul.f32 %v1587_v62, %v674_v59  ;;  %v633_v62 = vsub.f32 1.0, %v632_v4  ;;  %v678_v19 = vsub.f32 1.0, %v677_v14  ;;  %v654_v45 = vsel %vm653_vm1, %v1260_v7, %v650_v34  ;;  %v1007_v4 = vld [vmem:[%s1821_s9 + $0x8] sm:$0xff] }
 0x2ac   :  { %v659_v50 = vsel %vm656_vm3, %v658_v46, %v654_v45 }
 0x2ad   :  { %v634_v13 = vmul.f32 %v1258_v61, %v633_v62  ;;  %v679_v27 = vmul.f32 %v1262_v9, %v678_v19 }
 0x2af   :  { %v635_v21 = vadd.f32 %v1258_v61, %v634_v13  ;;  %v680_v32 = vadd.f32 %v1262_v9, %v679_v27 }
 0x2b1   :  { %v774_v1 = vpop.permute.xlu2 %773  ;;  %v1660_v5 = vpop.xlane.xlu1 %608  ;;  %v639_v30 = vsel %vm638_vm8, %v1258_v61, %v635_v21  ;;  %v684_v47 = vsel %vm1699_vm2, %v1262_v9, %v680_v32  ;;  %v660_v61 = vmul.f32 %v1589_v0, %v659_v50  ;;  %v1047_v32 = vld [vmem:[%s1823_s11 + $0x20] sm:$0xff] }
 0x2b2   :  { %v795_v2 = vmul.f32 %v774_v1, %v675_v63  ;;  %1263 = vrcp.f32 %v1660_v5  ;;  %v644_v33 = vsel %vm641_vm9, %v643_v31, %v639_v30  ;;  %v689_v57 = vsel %vm686_vm4, %v688_v48, %v684_v47  ;;  %v1009_v30 = vld [vmem:[%s1822_s10 + $0x8] sm:$0xff]  ;;  %v1050_v31 = vld [vmem:[%s1823_s11 + $0x38] sm:$0xff] }
 0x2b3   :  { %v645_v44 = vmul.f32 %v1583_v43, %v644_v33  ;;  %v807_v43 = vld [vmem:[%s1818_s6 + $0x38] sm:$0xff]  ;;  %vm696_vm7 = vweird.f32 %v1660_v5  ;;  %v702_v63 = vand.u32 2147483648, %v1660_v5  ;;  %v690_v1 = vmul.f32 %v1595_v3, %v689_v57  ;;  %v1049_v33 = vld [vmem:[%s1823_s11 + $0x30] sm:$0xff] }
 0x2b4   :  { %1181 = vmatmul.msk.f32.vlgmr.msrb.gmra.mxu0 %vm543_vm12, %v795_v2  ;;  %v700_v6 = vand.u32 2147483647, %v1660_v5 }
 0x2b5   :  { %v703_v11 = vor.u32 1.1754944e-38, %v702_v63  ;;  %1069 = vmatpush.msrb.mxu0 %v1050_v31  ;;  %v1006_v63 = vld [vmem:[%s1821_s9] sm:$0xff]  ;;  %s1305_s9 = smov [#allocation2]  }
 0x2b6   :  { %vm701_vm14 = vcmp.eq.f32.partialorder %v700_v6, 8.507059e+37 }
 0x2b7   :  { %1070 = vmatpush.msrb.mxu0 %v1049_v33 }
 0x2b8   :  { %v1674_v16 = vpop.eup %1263 }
 0x2b9   :  { %v1669_v10 = vpop.xlane.xlu0 %614  ;;  %v692_v28 = vmul.f32 %v1674_v16, %v1660_v5  ;;  %vm697_vm5 = vweird.f32 %v1674_v16  ;;  %v790_v24 = vpop.permute.xlu2 %789  ;;  %1071 = vmatpush.msrb.mxu0 %v1048_v35 }
 0x2ba   :  { %1265 = vrcp.f32 %v1669_v10  ;;  %v1676_v20 = vpop.xlane.xlu1 %611  ;;  %v732_v60 = vand.u32 2147483648, %v1669_v10  ;;  %vm726_vm8 = vweird.f32 %v1669_v10  ;;  %v730_v2 = vand.u32 2147483647, %v1669_v10  ;;  %vm1725_vm9 = vmor %vm696_vm7, %vm697_vm5 }
 0x2bb   :  { %1267 = vrcp.f32 %v1676_v20  ;;  %v693_v36 = vsub.f32 1.0, %v692_v28  ;;  %v717_v15 = vand.u32 2147483648, %v1676_v20  ;;  %vm711_vm1 = vweird.f32 %v1676_v20  ;;  %1072 = vmatpush.msrb.mxu0 %v1047_v32 }
 0x2bc   :  { %v733_v9 = vor.u32 1.1754944e-38, %v732_v60  ;;  %vm731_vm13 = vcmp.eq.f32.partialorder %v730_v2, 8.507059e+37  ;;  %v715_v19 = vand.u32 2147483647, %v1676_v20  ;;  %v1044_v60 = vld [vmem:[%s1823_s11 + $0x8] sm:$0xff] }
 0x2bd   :  { %v694_v49 = vmul.f32 %v1674_v16, %v693_v36  ;;  %v718_v25 = vor.u32 1.1754944e-38, %v717_v15  ;;  %v1046_v36 = vld [vmem:[%s1823_s11 + $0x18] sm:$0xff] }
 0x2be   :  { %vm716_vm3 = vcmp.eq.f32.partialorder %v715_v19, 8.507059e+37  ;;  %1073 = vmatpush.msrb.mxu0 %v1046_v36 }
 0x2bf   :  { %v695_v54 = vadd.f32 %v1674_v16, %v694_v49 }
 0x2c0   :  { %v1681_v23 = vpop.eup %1265 }
 0x2c1   :  { %v722_v29 = vmul.f32 %v1681_v23, %v1669_v10  ;;  %v1692_v38 = vpop.eup %1267  ;;  %vm727_vm6 = vweird.f32 %v1681_v23  ;;  %v699_v3 = vsel %vm1725_vm9, %v1674_v16, %v695_v54  ;;  %v796_v10 = vmul.f32 %v1644_v56, %v690_v1 }
 0x2c2   :  { %v707_v52 = vmul.f32 %v1692_v38, %v1676_v20  ;;  %vm728_vm10 = vmor %vm726_vm8, %vm727_vm6  ;;  %v704_v13 = vsel %vm701_vm14, %v703_v11, %v699_v3  ;;  %vm712_vm15 = vweird.f32 %v1692_v38  ;;  %v1011_v20 = vld [vmem:[%s1822_s10 + $0x18] sm:$0xff] }
 0x2c3   :  { %v723_v37 = vsub.f32 1.0, %v722_v29  ;;  %v705_v56 = vmul.f32 %v1599_v12, %v704_v13  ;;  %vm713_vm2 = vmor %vm711_vm1, %vm712_vm15  ;;  %v1010_v29 = vld [vmem:[%s1822_s10 + $0x10] sm:$0xff] }
 0x2c4   :  { %v708_v59 = vsub.f32 1.0, %v707_v52 }
 0x2c5   :  { %v724_v51 = vmul.f32 %v1681_v23, %v723_v37  ;;  %v1045_v37 = vld [vmem:[%s1823_s11 + $0x10] sm:$0xff] }
 0x2c6   :  { %v709_v0 = vmul.f32 %v1692_v38, %v708_v59  ;;  %1074 = vmatpush.msrb.mxu0 %v1045_v37 }
 0x2c7   :  { %v725_v58 = vadd.f32 %v1681_v23, %v724_v51 }
 0x2c8   :  { %v710_v14 = vadd.f32 %v1692_v38, %v709_v0  ;;  %1075 = vmatpush.msrb.mxu0 %v1044_v60 }
 0x2c9   :  { %v729_v62 = vsel %vm728_vm10, %v1681_v23, %v725_v58 }
 0x2ca   :  { %v734_v5 = vsel %vm731_vm13, %v733_v9, %v729_v62  ;;  %v714_v23 = vsel %vm713_vm2, %v1692_v38, %v710_v14  ;;  %v1216_v62 = vld [vmem:[%s1824_s12] ss:$0 sm:$0xff] }
 0x2cb   :  { %v735_v16 = vmul.f32 %v1606_v17, %v734_v5  ;;  %v719_v27 = vsel %vm716_vm3, %v718_v25, %v714_v23 }
 0x2cc   :  { %v766_v53 = vpop.permute.xlu0 %765  ;;  %v720_v17 = vmul.f32 %v1608_v18, %v719_v27  ;;  %v1008_v18 = vld [vmem:[%s1822_s10] sm:$0xff] }
 0x2cd   :  { %v793_v55 = vmul.f32 %v766_v53, %v645_v44  ;;  %v799_v26 = vmul.f32 %v790_v24, %v735_v16 }
 0x2cf   :  { %1179 = vmatmul.msk.f32.vlgmr.msrb.gmra.mxu2 %vm543_vm12, %v793_v55 }
 0x2d0   :  { %987 = vmatpush.msrb.mxu2 %v807_v43 }
 0x2d2   :  { %v770_v7 = vpop.permute.xlu1 %769 }
 0x2d3   :  { %v794_v8 = vmul.f32 %v770_v7, %v660_v61  ;;  %v1043_v61 = vld [vmem:[%s1823_s11] sm:$0xff]  ;;  %s1130_s11 = sshll.u32 %s1305_s9, 4  ;;  %s1131_s11 = int_to_ptr.vmem [resolvable:$true] %s1130_s11 }
 0x2d4   :  { %1076 = vmatpush.msrb.mxu0 %v1043_v61 }
 0x2d5   :  { %1180 = vmatmul.msk.f32.vlgmr.msra.gmra.mxu3 %vm543_vm12, %v794_v8 }
 0x2d6   :  { %1030 = vmatpush.msra.mxu3 %v1011_v20 }
 0x2d7   :  { %1182 = vmatmul.msk.f32.vlgmr.msra.gmra.mxu2 %vm543_vm12, %v796_v10 }
 0x2d8   :  { %1031 = vmatpush.msra.mxu3 %v1010_v29 }
 0x2da   :  { %v782_v21 = vpop.permute.xlu1 %781  ;;  %1032 = vmatpush.msra.mxu3 %v1009_v30 }
 0x2db   :  { %v797_v22 = vmul.f32 %v782_v21, %v705_v56 }
 0x2dc   :  { %1033 = vmatpush.msra.mxu3 %v1008_v18 }
 0x2dd   :  { %1183 = vmatmul.msk.f32.vlgmr.msrb.gmra.mxu3 %vm543_vm12, %v797_v22 }
 0x2df   :  { %1185 = vmatmul.msk.f32.vlgmr.msrb.gmra.mxu2 %vm543_vm12, %v799_v26 }
 0x2e2   :  { %v786_v28 = vpop.permute.xlu1 %785 }
 0x2e3   :  { %v798_v12 = vmul.f32 %v786_v28, %v720_v17 }
 0x2e5   :  { %1184 = vmatmul.msk.f32.vlgmr.msra.gmra.mxu0 %vm543_vm12, %v798_v12 }
 0x322   :  { %v828_v34 = vpop.f32.mrf.mxu2 }
 0x323   :  { %v992_v40 = vsel %vm264_vm11, %v828_v34, 0.0 }
 0x331   :  { %v897_v41 = vpop.f32.mrf.mxu0 }
 0x332   :  { %v997_v49 = vsel %vm264_vm11, %v897_v41, 0.0 }
 0x352   :  { %v851_v38 = vpop.f32.mrf.mxu2 }
 0x353   :  { %v993_v39 = vsel %vm264_vm11, %v851_v38, 0.0 }
 0x354   :  { %v994_v42 = vadd.f32 %v993_v39, %v992_v40 }
 0x358   :  { %v874_v44 = vpop.f32.mrf.mxu3 }
 0x359   :  { %v995_v45 = vsel %vm264_vm11, %v874_v44, 0.0 }
 0x35a   :  { %v996_v46 = vadd.f32 %v995_v45, %v994_v42  ;;  %v920_v47 = vpop.f32.mrf.mxu2 }
 0x35b   :  { %v999_v48 = vsel %vm264_vm11, %v920_v47, 0.0 }
 0x35c   :  { %v998_v51 = vadd.f32 %v997_v49, %v996_v46 }
 0x35e   :  { %1186 = vmatmul.msk.f32.vlgmr.msra.gmra.mxu3 %vm264_vm11, %v998_v51 }
 0x360   :  { %v943_v52 = vpop.f32.mrf.mxu3 }
 0x361   :  { %v1000_v53 = vsel %vm264_vm11, %v943_v52, 0.0 }
 0x362   :  { %v1001_v55 = vadd.f32 %v1000_v53, %v999_v48  ;;  %v966_v50 = vpop.f32.mrf.mxu0  ;;  %v989_v43 = vpop.f32.mrf.mxu2 }
 0x363   :  { %v1002_v57 = vsel %vm264_vm11, %v966_v50, 0.0  ;;  %v1004_v58 = vsel %vm264_vm11, %v989_v43, 0.0 }
 0x364   :  { %v1003_v59 = vadd.f32 %v1002_v57, %v1001_v55 }
 0x366   :  { %v1005_v54 = vadd.f32 %v1004_v58, %v1003_v59 }
 0x368   :  { %1187 = vmatmul.msk.f32.gmra.mxu3 %vm264_vm11, %v1005_v54 }
 0x3e1   :  { %v1035_v1 = vpop.f32.mrf.mxu3 }
 0x3e2   :  { %v1041_v2 = vadd.f32 %v1035_v1, %v1006_v63 }
 0x3e4   :  { %1188 = vmatmul.msk.f32.vlgmr.msrb.gmra.mxu0 %vm59_vm0, %v1041_v2 }
 0x3eb   :  { %v1038_v6 = vpop.f32.mrf.mxu3 }
 0x3ec   :  { %v1042_v7 = vadd.f32 %v1038_v6, %v1007_v4 }
 0x3ee   :  { %1189 = vmatmul.msk.f32.gmra.mxu0 %vm59_vm0, %v1042_v7 }
 0x461   :  { %v1078_v0 = vpop.f32.mrf.mxu0 }
 0x462   :  { %v1079_v8 = vadd.f32 %v1216_v62, %v1078_v0 }
 0x464   :  { %v1084_v3 = vsub.f32 0.0, %v1079_v8 }
 0x466   :  { %v1086_v9 = vmul.f32 1.442695, %v1084_v3 }
 0x468   :  { %1269 = vpow2.f32 %v1086_v9 }
 0x46b   :  { %v1081_v11 = vpop.f32.mrf.mxu0 }
 0x46c   :  { %v1082_v10 = vadd.f32 %v1216_v62, %v1081_v11 }
 0x46e   :  { %v1270_v5 = vpop.eup %1269  ;;  %v1085_v13 = vsub.f32 0.0, %v1082_v10 }
 0x46f   :  { %v1090_v14 = vadd.f32 1.0, %v1270_v5 }
 0x470   :  { %v1088_v15 = vmul.f32 1.442695, %v1085_v13 }
 0x471   :  { %1271 = vrcp.f32 %v1090_v14  ;;  %v1103_v23 = vand.u32 2147483648, %v1090_v14  ;;  %v1101_v25 = vand.u32 2147483647, %v1090_v14  ;;  %vm1097_vm12 = vweird.f32 %v1090_v14 }
 0x472   :  { %1273 = vpow2.f32 %v1088_v15 }
 0x473   :  { %v1104_v27 = vor.u32 1.1754944e-38, %v1103_v23  ;;  %vm1102_vm5 = vcmp.eq.f32.partialorder %v1101_v25, 8.507059e+37 }
 0x477   :  { %v1272_v16 = vpop.eup %1271 }
 0x478   :  { %v1274_v56 = vpop.eup %1273  ;;  %v1093_v19 = vmul.f32 %v1272_v16, %v1090_v14  ;;  %vm1098_vm11 = vweird.f32 %v1272_v16 }
 0x479   :  { %v1091_v21 = vadd.f32 1.0, %v1274_v56  ;;  %vm1099_vm4 = vmor %vm1097_vm12, %vm1098_vm11 }
 0x47a   :  { %v1094_v22 = vsub.f32 1.0, %v1093_v19 }
 0x47b   :  { %1275 = vrcp.f32 %v1091_v21  ;;  %v1118_v18 = vand.u32 2147483648, %v1091_v21  ;;  %v1116_v33 = vand.u32 2147483647, %v1091_v21  ;;  %vm1112_vm7 = vweird.f32 %v1091_v21 }
 0x47c   :  { %v1095_v24 = vmul.f32 %v1272_v16, %v1094_v22 }
 0x47d   :  { %v1119_v35 = vor.u32 1.1754944e-38, %v1118_v18  ;;  %vm1117_vm9 = vcmp.eq.f32.partialorder %v1116_v33, 8.507059e+37 }
 0x47e   :  { %v1096_v26 = vadd.f32 %v1272_v16, %v1095_v24 }
 0x480   :  { %v1100_v17 = vsel %vm1099_vm4, %v1272_v16, %v1096_v26 }
 0x481   :  { %v1276_v28 = vpop.eup %1275  ;;  %v1105_v12 = vsel %vm1102_vm5, %v1104_v27, %v1100_v17 }
 0x482   :  { %v1108_v20 = vmul.f32 %v1276_v28, %v1091_v21  ;;  %v1122_v29 = vmul.f32 %v1105_v12, %v1041_v2  ;;  %vm1113_vm6 = vweird.f32 %v1276_v28 }
 0x483   :  { %vm1114_vm8 = vmor %vm1112_vm7, %vm1113_vm6 }
 0x484   :  { %v1109_v30 = vsub.f32 1.0, %v1108_v20  ;;  %1124 = vst.msk [vmem:[#allocation2] sm:$0xff] %vm59_vm0, %v1122_v29 }
 0x486   :  { %v1110_v31 = vmul.f32 %v1276_v28, %v1109_v30 }
 0x488   :  { %v1111_v34 = vadd.f32 %v1276_v28, %v1110_v31 }
 0x48a   :  { %v1115_v32 = vsel %vm1114_vm8, %v1276_v28, %v1111_v34 }
 0x48b   :  { %v1120_v36 = vsel %vm1117_vm9, %v1119_v35, %v1115_v32 }
 0x48c   :  { %v1123_v37 = vmul.f32 %v1120_v36, %v1042_v7 }
 0x48e   :  { %1125 = vst.msk [vmem:[#allocation2 + $0x8] sm:$0xff] %vm59_vm0, %v1123_v37 }
 0x48f   :  { %1138 = dma.vmem_to_hbm [thread:$0]  %s1131_s11, 256, %s1133_s23, [#allocation3], %s1306_s24, %s1306_s24, %s1307_s25  }
 0x490   :  { %1301 = dma.done.wait [#allocation3], 256  }
 0x491   :  { %1302 = vsyncadd [#allocation3], 4294967040 }
 0x492   :  { %1143 = vsyncpa [#allocation3], 1 }

</bundles_post_ra>
